<compile_context>
chip_gen: v6e
topology: v6e:2x2x1
jax: 0.10.0
libtpu: 0.0.40
codegen_flags: <defaults>
</compile_context>

<pallas_src>
import jax
import jax.numpy as jnp
from jax.experimental import pallas as pl
from jax.experimental.pallas import tpu as pltpu

_LN_EPS = 1e-5  # PyTorch nn.LayerNorm default eps


def _round_up(x, m):
    return ((x + m - 1) // m) * m


def _layernorm(h, gamma, beta):
    """LayerNorm with two independent row reductions + EUP rsqrt (f32)."""
    inv_n = 1.0 / h.shape[-1]
    s1 = jnp.sum(h, axis=-1, keepdims=True)          # XLU reduce #1
    s2 = jnp.sum(h * h, axis=-1, keepdims=True)      # XLU reduce #2 (independent)
    mu = s1 * inv_n
    var = s2 * inv_n - mu * mu
    inv = jax.lax.rsqrt(var + _LN_EPS)                # EUP; keeps the VALU free
    return (h - mu) * inv * gamma + beta


def _net_fwd_kernel(x_ref, w_ref, vec_ref, q_ref):
    x = x_ref[...]                       # (TB, W) bf16
    vecs = vec_ref[...]                  # (8, W)  f32  -- one vreg

    b1, g1, be1 = vecs[0:1, :], vecs[1:2, :], vecs[2:3, :]
    b2, g2, be2 = vecs[3:4, :], vecs[4:5, :], vecs[5:6, :]
    bmu = vecs[6:7, :]

    # linear1 + ln1 + relu   (dropout p=0.0 -> identity)
    h = jnp.dot(x, w_ref[0], preferred_element_type=jnp.float32) + b1
    h = jnp.maximum(_layernorm(h, g1, be1), 0.0)

    # linear2 + ln2 + relu
    h = jnp.dot(h.astype(jnp.bfloat16), w_ref[1],
                preferred_element_type=jnp.float32) + b2
    h = jnp.maximum(_layernorm(h, g2, be2), 0.0)

    # mu head + tanh          (embd is None in the default config)
    q = jnp.dot(h.astype(jnp.bfloat16), w_ref[2],
                preferred_element_type=jnp.float32) + bmu
    q_ref[...] = jnp.tanh(q).astype(q_ref.dtype)


def pack_params(params):
    """Pack the 10 parameter arrays into two slabs (done ONCE, outside the hot loop).

    params = (w1, b1, g1, be1, w2, b2, g2, be2, wmu, bmu), with every weight
    matrix pre-transposed to (in_features, out_features) and vectors 1-D.

    Returns (w_slab bf16 (3, W, W), vec_slab f32 (8, W), meta=(d_in, n_out, W)).
    """
    w1, b1, g1, be1, w2, b2, g2, be2, wmu, bmu = params
    d_in, h = w1.shape
    h2, n_out = wmu.shape
    assert w2.shape == (h, h) and h2 == h
    w = _round_up(max(d_in, h, n_out), 128)
    assert h == w, "hidden_size must equal the 128-padded slab width (see TODO)"

    def pad_mat(m):
        return jnp.zeros((w, w), jnp.float32).at[: m.shape[0], : m.shape[1]].set(
            m.astype(jnp.float32))

    def pad_vec(v):
        v = jnp.asarray(v, jnp.float32).reshape(-1)
        return jnp.zeros((w,), jnp.float32).at[: v.shape[0]].set(v)

    w_slab = jnp.stack([pad_mat(w1), pad_mat(w2), pad_mat(wmu)]).astype(jnp.bfloat16)
    vec_slab = jnp.stack([pad_vec(b1), pad_vec(g1), pad_vec(be1),
                          pad_vec(b2), pad_vec(g2), pad_vec(be2),
                          pad_vec(bmu), jnp.zeros((w,), jnp.float32)])
    return w_slab, vec_slab, (d_in, n_out, w)


def net_forward(x, w_slab, vec_slab, meta, *, tb=256):
    """Fused forward of Net (default config) with a batch grid."""
    d_in, n_out, w = meta
    b = x.shape[0]
    assert x.shape[1] == d_in

    tb = max(16, min(tb, _round_up(b, 16)))
    tb = _round_up(tb, 16)                       # bf16 sublane tile
    b_pad = _round_up(b, tb)

    # Pad rows to a TB multiple, columns to the slab width, cast once to bf16.
    xp = jnp.zeros((b_pad, w), jnp.bfloat16).at[:b, :d_in].set(
        x.astype(jnp.bfloat16))

    q = pl.pallas_call(
        _net_fwd_kernel,
        out_shape=jax.ShapeDtypeStruct((b_pad, w), jnp.float32),
        grid_spec=pltpu.PrefetchScalarGridSpec(
            num_scalar_prefetch=0,
            grid=(pl.cdiv(b_pad, tb),),
            in_specs=[
                pl.BlockSpec((tb, w), lambda i: (i, 0)),        # x tile
                pl.BlockSpec((3, w, w), lambda i: (0, 0, 0)),   # weight slab (resident)
                pl.BlockSpec((8, w), lambda i: (0, 0)),         # bias/LN slab (resident)
            ],
            out_specs=pl.BlockSpec((tb, w), lambda i: (i, 0)),
        ),
        compiler_params=pltpu.CompilerParams(
            dimension_semantics=("parallel",)),
    )(xp, w_slab, vec_slab)

    return q[:b, :n_out]


def net_forward_ref(x, params, *, bf16_dots=False):
    """Pure-JAX reference (same math as the PyTorch forward, default config)."""
    w1, b1, g1, be1, w2, b2, g2, be2, wmu, bmu = params

    def dot(a, wm):
        if bf16_dots:
            return jnp.dot(a.astype(jnp.bfloat16), wm.astype(jnp.bfloat16),
                           preferred_element_type=jnp.float32)
        return jnp.dot(a, wm, preferred_element_type=jnp.float32)

    def ln(h, g, bta):
        mu = jnp.mean(h, axis=-1, keepdims=True)
        var = jnp.mean((h - mu) ** 2, axis=-1, keepdims=True)
        return (h - mu) / jnp.sqrt(var + _LN_EPS) * g + bta

    h = jnp.maximum(ln(dot(x, w1) + b1, g1, be1), 0.0)
    h = jnp.maximum(ln(dot(h, w2) + b2, g2, be2), 0.0)
    return jnp.tanh(dot(h, wmu) + bmu)


if __name__ == "__main__":
    # Small shapes consistent with the module: num_inputs=32, hidden_size=128,
    # num_outputs=10 actions, batch=64 (two grid steps at TB=32).
    B, D_IN, H, N_OUT = 64, 32, 128, 10

    key = jax.random.PRNGKey(0)
    ks = jax.random.split(key, 10)
    x = jax.random.normal(ks[0], (B, D_IN), dtype=jnp.float32)

    def kaiming(k, fan_out, shape):
        return jax.random.normal(k, shape, dtype=jnp.float32) * jnp.sqrt(2.0 / fan_out)

    # Weights stored pre-transposed: (in_features, out_features).
    w1 = kaiming(ks[1], H, (D_IN, H))
    w2 = kaiming(ks[2], H, (H, H))
    wmu = kaiming(ks[3], N_OUT, (H, N_OUT)) * 0.1        # Net scales mu weights by 0.1
    # Non-trivial biases / LN affine params for a stronger correctness check.
    b1 = 0.05 * jax.random.normal(ks[4], (H,), jnp.float32)
    b2 = 0.05 * jax.random.normal(ks[5], (H,), jnp.float32)
    bmu = 0.01 * jax.random.normal(ks[6], (N_OUT,), jnp.float32)
    g1 = 1.0 + 0.05 * jax.random.normal(ks[7], (H,), jnp.float32)
    g2 = 1.0 + 0.05 * jax.random.normal(ks[8], (H,), jnp.float32)
    be1 = 0.05 * jax.random.normal(ks[9], (H,), jnp.float32)
    be2 = jnp.zeros((H,), jnp.float32)

    params = (w1, b1, g1, be1, w2, b2, g2, be2, wmu, bmu)

    # One-time packing (amortized across calls in a real rollout/eval loop).
    w_slab, vec_slab, meta = pack_params(params)

    q = net_forward(x, w_slab, vec_slab, meta, tb=32)
    jax.block_until_ready(q)
    assert q.shape == (B, N_OUT)
    assert bool(jnp.all(jnp.isfinite(q)))

    # Structural check vs. a reference that matches the bf16 dot inputs.
    q_ref_bf16 = net_forward_ref(x, params, bf16_dots=True)
    assert jnp.allclose(q, q_ref_bf16, atol=2e-3, rtol=2e-3), \
        float(jnp.max(jnp.abs(q - q_ref_bf16)))

    # Accuracy check vs. the full-f32 reference (bf16 operand rounding only).
    q_ref_f32 = net_forward_ref(x, params, bf16_dots=False)
    assert jnp.allclose(q, q_ref_f32, atol=5e-2, rtol=5e-2), \
        float(jnp.max(jnp.abs(q - q_ref_f32)))

    print("KERNEL_OK")
</pallas_src>

<mosaic_0001>
module attributes {stable_mosaic.version = 11 : i64} {
  func.func @_net_fwd_kernel(%arg0: i32, %arg1: memref<32x128xbf16, #tpu.memory_space<vmem>>, %arg2: memref<3x128x128xbf16, #tpu.memory_space<vmem>>, %arg3: memref<8x128xf32, #tpu.memory_space<vmem>>, %arg4: memref<32x128xf32, #tpu.memory_space<vmem>>) attributes {dimension_semantics = [#tpu.dimension_semantics<parallel>], iteration_bounds = array<i64: 2>, scalar_prefetch = 0 : i64, scratch_operands = 0 : i64, tpu.core_type = #tpu.core_type<tc>, window_params = [{transform_indices = @transform_0, window_bounds = array<i64: 32, 128>}, {pipeline_mode = #tpu.pipeline_mode<synchronous>, transform_indices = @transform_1, window_bounds = array<i64: 3, 128, 128>}, {pipeline_mode = #tpu.pipeline_mode<synchronous>, transform_indices = @transform_2, window_bounds = array<i64: 8, 128>}, {transform_indices = @transform_3, window_bounds = array<i64: 32, 128>}]} {
    %c0 = arith.constant 0 : index
    %c0_0 = arith.constant 0 : index
    %0 = vector.load %arg1[%c0, %c0_0] : memref<32x128xbf16, #tpu.memory_space<vmem>>, vector<32x128xbf16>
    %c0_1 = arith.constant 0 : index
    %c0_2 = arith.constant 0 : index
    %1 = vector.load %arg3[%c0_1, %c0_2] : memref<8x128xf32, #tpu.memory_space<vmem>>, vector<8x128xf32>
    %2 = vector.extract_strided_slice %1 {offsets = [0, 0], sizes = [1, 128], strides = [1, 1]} : vector<8x128xf32> to vector<1x128xf32>
    %3 = vector.extract_strided_slice %1 {offsets = [1, 0], sizes = [1, 128], strides = [1, 1]} : vector<8x128xf32> to vector<1x128xf32>
    %4 = vector.extract_strided_slice %1 {offsets = [2, 0], sizes = [1, 128], strides = [1, 1]} : vector<8x128xf32> to vector<1x128xf32>
    %5 = vector.extract_strided_slice %1 {offsets = [3, 0], sizes = [1, 128], strides = [1, 1]} : vector<8x128xf32> to vector<1x128xf32>
    %6 = vector.extract_strided_slice %1 {offsets = [4, 0], sizes = [1, 128], strides = [1, 1]} : vector<8x128xf32> to vector<1x128xf32>
    %7 = vector.extract_strided_slice %1 {offsets = [5, 0], sizes = [1, 128], strides = [1, 1]} : vector<8x128xf32> to vector<1x128xf32>
    %8 = vector.extract_strided_slice %1 {offsets = [6, 0], sizes = [1, 128], strides = [1, 1]} : vector<8x128xf32> to vector<1x128xf32>
    %c0_3 = arith.constant 0 : index
    %c0_4 = arith.constant 0 : index
    %c0_5 = arith.constant 0 : index
    %9 = vector.load %arg2[%c0_3, %c0_4, %c0_5] : memref<3x128x128xbf16, #tpu.memory_space<vmem>>, vector<1x128x128xbf16>
    %10 = vector.shape_cast %9 : vector<1x128x128xbf16> to vector<128x128xbf16>
    %cst = arith.constant dense<0.000000e+00> : vector<32x128xf32>
    %11 = tpu.matmul %0, %10, %cst {dimension_numbers = #tpu.dot_dimension_numbers<[1], [0], [0], [1], [0, 0, 1, 1], [], []>} : vector<32x128xbf16>, vector<128x128xbf16>, vector<32x128xf32> -> vector<32x128xf32>
    %12 = vector.broadcast %2 : vector<1x128xf32> to vector<32x128xf32>
    %13 = arith.addf %11, %12 : vector<32x128xf32>
    %cst_6 = arith.constant dense<0.000000e+00> : vector<32xf32>
    %14 = vector.multi_reduction <add>, %13, %cst_6 [1] : vector<32x128xf32> to vector<32xf32>
    %15 = vector.shape_cast %14 : vector<32xf32> to vector<32x1xf32>
    %16 = arith.mulf %13, %13 : vector<32x128xf32>
    %cst_7 = arith.constant dense<0.000000e+00> : vector<32xf32>
    %17 = vector.multi_reduction <add>, %16, %cst_7 [1] : vector<32x128xf32> to vector<32xf32>
    %18 = vector.shape_cast %17 : vector<32xf32> to vector<32x1xf32>
    %cst_8 = arith.constant 7.812500e-03 : f32
    %19 = vector.broadcast %cst_8 : f32 to vector<32x1xf32>
    %20 = arith.mulf %15, %19 : vector<32x1xf32>
    %cst_9 = arith.constant 7.812500e-03 : f32
    %21 = vector.broadcast %cst_9 : f32 to vector<32x1xf32>
    %22 = arith.mulf %18, %21 : vector<32x1xf32>
    %23 = arith.mulf %20, %20 : vector<32x1xf32>
    %24 = arith.subf %22, %23 : vector<32x1xf32>
    %cst_10 = arith.constant 9.99999974E-6 : f32
    %25 = vector.broadcast %cst_10 : f32 to vector<32x1xf32>
    %26 = arith.addf %24, %25 : vector<32x1xf32>
    %27 = math.rsqrt %26 : vector<32x1xf32>
    %28 = vector.broadcast %20 : vector<32x1xf32> to vector<32x128xf32>
    %29 = arith.subf %13, %28 : vector<32x128xf32>
    %30 = vector.broadcast %27 : vector<32x1xf32> to vector<32x128xf32>
    %31 = arith.mulf %29, %30 : vector<32x128xf32>
    %32 = vector.broadcast %3 : vector<1x128xf32> to vector<32x128xf32>
    %33 = arith.mulf %31, %32 : vector<32x128xf32>
    %34 = vector.broadcast %4 : vector<1x128xf32> to vector<32x128xf32>
    %35 = arith.addf %33, %34 : vector<32x128xf32>
    %cst_11 = arith.constant 0.000000e+00 : f32
    %36 = vector.broadcast %cst_11 : f32 to vector<32x128xf32>
    %37 = arith.maximumf %35, %36 : vector<32x128xf32>
    %38 = arith.truncf %37 : vector<32x128xf32> to vector<32x128xbf16>
    %c1 = arith.constant 1 : index
    %c0_12 = arith.constant 0 : index
    %c0_13 = arith.constant 0 : index
    %39 = vector.load %arg2[%c1, %c0_12, %c0_13] : memref<3x128x128xbf16, #tpu.memory_space<vmem>>, vector<1x128x128xbf16>
    %40 = vector.shape_cast %39 : vector<1x128x128xbf16> to vector<128x128xbf16>
    %cst_14 = arith.constant dense<0.000000e+00> : vector<32x128xf32>
    %41 = tpu.matmul %38, %40, %cst_14 {dimension_numbers = #tpu.dot_dimension_numbers<[1], [0], [0], [1], [0, 0, 1, 1], [], []>} : vector<32x128xbf16>, vector<128x128xbf16>, vector<32x128xf32> -> vector<32x128xf32>
    %42 = vector.broadcast %5 : vector<1x128xf32> to vector<32x128xf32>
    %43 = arith.addf %41, %42 : vector<32x128xf32>
    %cst_15 = arith.constant dense<0.000000e+00> : vector<32xf32>
    %44 = vector.multi_reduction <add>, %43, %cst_15 [1] : vector<32x128xf32> to vector<32xf32>
    %45 = vector.shape_cast %44 : vector<32xf32> to vector<32x1xf32>
    %46 = arith.mulf %43, %43 : vector<32x128xf32>
    %cst_16 = arith.constant dense<0.000000e+00> : vector<32xf32>
    %47 = vector.multi_reduction <add>, %46, %cst_16 [1] : vector<32x128xf32> to vector<32xf32>
    %48 = vector.shape_cast %47 : vector<32xf32> to vector<32x1xf32>
    %cst_17 = arith.constant 7.812500e-03 : f32
    %49 = vector.broadcast %cst_17 : f32 to vector<32x1xf32>
    %50 = arith.mulf %45, %49 : vector<32x1xf32>
    %cst_18 = arith.constant 7.812500e-03 : f32
    %51 = vector.broadcast %cst_18 : f32 to vector<32x1xf32>
    %52 = arith.mulf %48, %51 : vector<32x1xf32>
    %53 = arith.mulf %50, %50 : vector<32x1xf32>
    %54 = arith.subf %52, %53 : vector<32x1xf32>
    %cst_19 = arith.constant 9.99999974E-6 : f32
    %55 = vector.broadcast %cst_19 : f32 to vector<32x1xf32>
    %56 = arith.addf %54, %55 : vector<32x1xf32>
    %57 = math.rsqrt %56 : vector<32x1xf32>
    %58 = vector.broadcast %50 : vector<32x1xf32> to vector<32x128xf32>
    %59 = arith.subf %43, %58 : vector<32x128xf32>
    %60 = vector.broadcast %57 : vector<32x1xf32> to vector<32x128xf32>
    %61 = arith.mulf %59, %60 : vector<32x128xf32>
    %62 = vector.broadcast %6 : vector<1x128xf32> to vector<32x128xf32>
    %63 = arith.mulf %61, %62 : vector<32x128xf32>
    %64 = vector.broadcast %7 : vector<1x128xf32> to vector<32x128xf32>
    %65 = arith.addf %63, %64 : vector<32x128xf32>
    %cst_20 = arith.constant 0.000000e+00 : f32
    %66 = vector.broadcast %cst_20 : f32 to vector<32x128xf32>
    %67 = arith.maximumf %65, %66 : vector<32x128xf32>
    %68 = arith.truncf %67 : vector<32x128xf32> to vector<32x128xbf16>
    %c2 = arith.constant 2 : index
    %c0_21 = arith.constant 0 : index
    %c0_22 = arith.constant 0 : index
    %69 = vector.load %arg2[%c2, %c0_21, %c0_22] : memref<3x128x128xbf16, #tpu.memory_space<vmem>>, vector<1x128x128xbf16>
    %70 = vector.shape_cast %69 : vector<1x128x128xbf16> to vector<128x128xbf16>
    %cst_23 = arith.constant dense<0.000000e+00> : vector<32x128xf32>
    %71 = tpu.matmul %68, %70, %cst_23 {dimension_numbers = #tpu.dot_dimension_numbers<[1], [0], [0], [1], [0, 0, 1, 1], [], []>} : vector<32x128xbf16>, vector<128x128xbf16>, vector<32x128xf32> -> vector<32x128xf32>
    %72 = vector.broadcast %8 : vector<1x128xf32> to vector<32x128xf32>
    %73 = arith.addf %71, %72 : vector<32x128xf32>
    %74 = math.tanh %73 : vector<32x128xf32>
    %c0_24 = arith.constant 0 : index
    %c0_25 = arith.constant 0 : index
    %75 = vector.load %arg4[%c0_24, %c0_25] : memref<32x128xf32, #tpu.memory_space<vmem>>, vector<32x128xf32>
    tpu.vector_store %arg4[%c0_24, %c0_25], %74 {strides = array<i32>} : memref<32x128xf32, #tpu.memory_space<vmem>>, vector<32x128xf32>,
    return
  }
  func.func @transform_0(%arg0: i32) -> (i32, i32) {
    %c0_i32 = arith.constant 0 : i32
    %c0_i32_0 = arith.constant 0 : i32
    return %arg0, %c0_i32 : i32, i32
  }
  func.func @transform_1(%arg0: i32) -> (i32, i32, i32) {
    %c0_i32 = arith.constant 0 : i32
    %c0_i32_0 = arith.constant 0 : i32
    %c0_i32_1 = arith.constant 0 : i32
    %c0_i32_2 = arith.constant 0 : i32
    return %c0_i32, %c0_i32_0, %c0_i32_1 : i32, i32, i32
  }
  func.func @transform_2(%arg0: i32) -> (i32, i32) {
    %c0_i32 = arith.constant 0 : i32
    %c0_i32_0 = arith.constant 0 : i32
    %c0_i32_1 = arith.constant 0 : i32
    return %c0_i32, %c0_i32_0 : i32, i32
  }
  func.func @transform_3(%arg0: i32) -> (i32, i32) {
    %c0_i32 = arith.constant 0 : i32
    %c0_i32_0 = arith.constant 0 : i32
    return %arg0, %c0_i32 : i32, i32
  }
}

</mosaic_0001>

<bundles_post_ra>
// kernel: tpu_custom_call.1
= control target key start
LH: loop header
LB: loop body
LE: loop exit
PB: predicated region body
PF: predicated region fallthrough
CT: control target
= control target key end

     0   :  { %8 = vsyncpa [#allocation3], 0  ;;  %s1547_s0 = inlined_call_operand.hbm [shape: bf16[64,128], index: 0, kind: input, shape index: {}]   ;;  %s1548_s1 = inlined_call_operand.hbm [shape: bf16[3,128,128], index: 1, kind: input, shape index: {}]   ;;  %s1549_s2 = inlined_call_operand.hbm [shape: f32[8,128], index: 2, kind: input, shape index: {}]   ;;  %s1550_s3 = inlined_call_operand.hbm [shape: f32[64,128], index: 3, kind: output, shape index: {}]  }
   0x1   :  { %10 = vsyncpa [#allocation3 + $0x1], 0 }
   0x2   :  { %11 = vsyncpa [#allocation6], 0 }
   0x3   :  { %12 = vsyncpa [#allocation4], 0 }
   0x4   :  { %14 = vsyncpa [#allocation4 + $0x1], 0  ;;  %s1286_s12 = smov 0   ;;  %s1288_s13 = smov 0  }
   0x5   :  { %s1290_s14 = smov 0   ;;  %s1292_s15 = smov 0  }
   0x6 LB: > { %s1307_s16 = sadd.s32 4294967295, %s1256_s15   ;;  %s851_s17 = sadd.s32 4294967294, %s1256_s15   ;;  %s1256_s15 = sphi %s1292_s15, %s1571_s15   ;;  %s1252_s14 = sphi %s1290_s14, %s1570_s14   ;;  %s1248_s13 = sphi %s1288_s13, %s1569_s13   ;;  %s1244_s12 = sphi %s1286_s12, %s1568_s12  }
   0x7   : > { %p40_p0 = scmp.ne.s32.totalorder %s1248_s13, %s1244_s12  ;;  %p1551_p1 = scmp.eq.s32.totalorder %s1307_s16, 0 }
   0x8   : > { %p106_p2 = scmp.eq.s32.totalorder %s1307_s16, 1  ;;  %p112_p3 = scmp.eq.s32.totalorder %s851_s17, 1 }
   0x9   : > { %p1316_p4 = por %p1551_p1, %p40_p0  ;;  %p852_p5 = scmp.ge.s32.totalorder %s1256_s15, 1 }
   0xa   : > { %p1321_p6 = por %p112_p3, %p40_p0  ;;  %p119_p7 = scmp.lt.s32.totalorder %s1256_s15, 3 }
   0xb   : > { %s1555_s18 = scalar_select %p1316_p4, 1, 0 }
   0xc   : > { %s1556_s19 = scalar_select %p1321_p6, 1, 0 }
   0xd   : > { %p1326_p8 = pnand %p852_p5, %p119_p7  ;;  %s1258_s21 = smov [#allocation5]  }
   0xe   : > { %s131_s22 = sshll.u32 %s1258_s21, 4  ;;  %s1259_s24 = smov [#allocation7]   ;;  %s132_s22 = int_to_ptr.vmem [resolvable:$true] %s131_s22 }
   0xf   : > { %s1557_s20 = scalar_select %p1326_p8, 1, 0 }
  0x10   : > { %p999_p9 = pneg %p1326_p8  ;;  %s145_s25 = sshll.u32 %s1259_s24, 4  ;;  %s146_s25 = int_to_ptr.vmem [resolvable:$true] %s145_s25 }
  0x11   : > { %s1119_s26 = scalar_lea.vmem %s132_s22, 3072  ;;  %p1127_p5 = scmp.lt.s32.totalorder %s132_s22, %s132_s22 }
  0x12   : > { %p1335_p11 = pnand %p999_p9, %p1551_p1  ;;  %p1120_p13 = scmp.ne.s32.totalorder %s132_s22, %s1119_s26 }
  0x13   : > { %p1128_p7 = scmp.lt.s32.totalorder %s1119_s26, %s1119_s26 }
  0x14   : > { %p1110_p12 = pneg %p1335_p11 }
  0x15   : > { %p1129_p10 = por %p1128_p7, %p1127_p5 }
  0x16   : > { %p1122_p0 = pnand %p1120_p13, %p1110_p12 }
  0x18   : > { %p1123_p3 = pneg %p1122_p0 }
  0x1a   : > { %p1130_p9 = pnand %p1129_p10, %p1123_p3 }
  0x1c   : > { %1133 = shalt.err (!%p1130_p9)
}
  0x1d   : > { %s1260_s27 = smov 64   ;;  %s1261_s28 = smov 4  }
  0x1e   : > { %1002 = dma.hbm_to_vmem [thread:$0]  (!%p1335_p11), %s1548_s1, 3072, %s132_s22, [#allocation6], %s1260_s27, %s1260_s27, %s1261_s28  }
  0x1f   : > { %s1145_s4 = scalar_lea.vmem %s146_s25, 128  ;;  %p1153_p10 = scmp.lt.s32.totalorder %s146_s25, %s146_s25 }
  0x20   : > { %p1146_p13 = scmp.ne.s32.totalorder %s146_s25, %s1145_s4  ;;  %p1154_p3 = scmp.lt.s32.totalorder %s1145_s4, %s1145_s4 }
  0x22   : > { %p1148_p0 = pnand %p1146_p13, %p1110_p12  ;;  %p1155_p7 = por %p1154_p3, %p1153_p10 }
  0x24   : > { %p1149_p5 = pneg %p1148_p0 }
  0x26   : > { %p1156_p9 = pnand %p1155_p7, %p1149_p5 }
  0x28   : > { %1159 = shalt.err (!%p1156_p9)
}
  0x29   : > { %1005 = dma.hbm_to_vmem [thread:$0]  (!%p1335_p11), %s1549_s2, 128, %s146_s25, [#allocation6]  }
  0x2a   : > { %s1361_s7 = sadd.s32 1, %s1256_s15   ;;  %s27_s8 = sadd.s32 1, %s1252_s14 }
  0x2b   : > { %s24_s9 = ssub.s32 %s1256_s15, %s1361_s7  ;;  %p34_p12 = scmp.ne.s32.totalorder %s1252_s14, %s1248_s13 }
  0x2c   : > { %p25_p13 = scmp.eq.s32.totalorder %s24_s9, 0  ;;  %p35_p0 = scmp.eq.s32.totalorder %s1256_s15, 0 }
  0x2d   : > { %p1371_p5 = por %p106_p2, %p34_p12  ;;  %p1016_p10 = scmp.lt.s32.totalorder %s1256_s15, 2 }
  0x2e   : > { %s1377_s11 = scalar_select %p25_p13, %s1252_s14, %s27_s8  }
  0x2f   : > { %s1559_s10 = scalar_select %p1371_p5, 1, 0 }
  0x30   : > { %p36_p3 = por %p35_p0, %p34_p12  ;;  %s156_s17 = sand.u32 1, %s1252_s14  }
  0x31   : > { %s856_s21 = sshll.u32 %s156_s17, 4  ;;  %s895_s22 = sshll.u32 %s1256_s15, 8 }
  0x32   : > { %s1384_s25 = scalar_lea.hbm %s1547_s0, %s895_s22  ;;  %s160_s26 = scalar_lea.vmem [#allocation2], %s856_s21 }
  0x33   : > { %s167_s29 = sshll.u32 %s160_s26, 4  ;;  %p1388_p2 = pnand %p1016_p10, %p36_p3  ;;  %s1386_s29 = int_to_ptr.vmem [resolvable:$true] %s167_s29 }
  0x34   : > { %s1392_s4 = scalar_lea.sflag [#allocation3], %s156_s17  ;;  %s1160_s5 = scalar_lea.hbm %s1384_s25, 256 }
  0x35   : > { %p1161_p11 = scmp.ne.s32.totalorder %s1384_s25, %s1160_s5  ;;  %p1162_p7 = pneg %p1388_p2 }
  0x36   : > { %s1165_s9 = scalar_lea.hbm %s1547_s0, 512  ;;  %p1166_p13 = scmp.lt.s32.totalorder %s1384_s25, %s1547_s0 }
  0x37   : > { %p1163_p9 = pnand %p1162_p7, %p1161_p11  ;;  %p1167_p0 = scmp.lt.s32.totalorder %s1165_s9, %s1160_s5 }
  0x39   : > { %p1164_p12 = pneg %p1163_p9  ;;  %p1168_p10 = por %p1167_p0, %p1166_p13 }
  0x3b   : > { %p1169_p3 = pnand %p1168_p10, %p1164_p12 }
  0x3d   : > { %1172 = shalt.err (!%p1169_p3)
}
  0x3e   : > { %s1173_s17 = scalar_lea.vmem %s1386_s29, 256  ;;  %s1262_s23 = smov [#allocation2]  }
  0x3f   : > { %p1174_p1 = scmp.ne.s32.totalorder %s1386_s29, %s1173_s17  ;;  %s1178_s24 = sshll.u32 %s1262_s23, 4  ;;  %s1179_s24 = int_to_ptr.vmem [resolvable:$false] %s1178_s24 }
  0x40   : > { %s1180_s26 = scalar_lea.vmem %s1179_s24, 512  ;;  %p1181_p9 = scmp.lt.s32.totalorder %s1386_s29, %s1179_s24 }
  0x41   : > { %p1176_p6 = pnand %p1174_p1, %p1162_p7  ;;  %p1182_p5 = scmp.lt.s32.totalorder %s1180_s26, %s1173_s17 }
  0x43   : > { %p1177_p11 = pneg %p1176_p6  ;;  %p1183_p4 = por %p1182_p5, %p1181_p9 }
  0x45   : > { %p1184_p8 = pnand %p1183_p4, %p1177_p11 }
  0x47   : > { %1187 = shalt.err (!%p1184_p8)
}
  0x48   : > { %1009 = dma.hbm_to_vmem [thread:$0]  (!%p1388_p2), %s1384_s25, 256, %s1386_s29, %s1392_s4, %s1260_s27, %s1260_s27, %s1261_s28  }
  0x49   : > { %p1561_p1 = scmp.ne.s32.totalorder %s1557_s20, 0 }
  0x4a   : > { %s1419_s5 = sand.u32 (!%p1561_p1), 1, %s1248_s13   ;;  %p1562_p4 = scmp.ne.s32.totalorder (!%p1561_p1), %s1555_s18, 0 }
  0x4b   : > { %179 = sbr.rel (%p1561_p1) target bundleno = 1102 (0x44e), region = 32  ;;  %s860_s6 = sshll.u32 (!%p1561_p1), %s1419_s5, 4 }
  0x4c   : > { %s182_s8 = scalar_lea.sflag (!%p1561_p1), [#allocation3], %s1419_s5  ;;  %s185_s9 = scalar_lea.vmem (!%p1561_p1), [#allocation2], %s860_s6 }
  0x50   : > { %1231 = dma.done.wait (%p1562_p4), %s182_s8, 256  }
  0x51   : > { %1233 = vsyncadd (%p1562_p4), %s182_s8, 4294967040  ;;  %p1563_p6 = scmp.eq.s32.totalorder %s1307_s16, 0 }
  0x53   : > { %1235 = dma.done.wait (%p1563_p6), [#allocation6], 3200   ;;  %p1564_p8 = pmov %p1563_p6 }
  0x54   : > { %v1058_v0 = vld [vmem:[#allocation5 + $0x38] sm:$0xff]   ;;  %v1059_v1 = vld [vmem:[#allocation5 + $0x30] sm:$0xff]   ;;  %v1060_v2 = vld [vmem:[#allocation5 + $0x28] sm:$0xff]   ;;  %v240_v10 = vlaneseq  ;;  %s863_s18 = sshll.u32 %s1419_s5, 5  ;;  %s896_s27 = sshll.u32 %s1307_s16, 9 }
  0x55   : > { %1237 = vsyncadd (%p1564_p8), [#allocation6], 4294964096  ;;  %927 = vmatprep.subr.bf16.mxu0 %v1058_v0  ;;  %v1061_v3 = vld [vmem:[#allocation5 + $0x20] sm:$0xff]   ;;  %v1062_v5 = vld [vmem:[#allocation5 + $0x18] sm:$0xff]   ;;  %s215_s20 = scalar_lea.vmem [#allocation8], %s863_s18  ;;  %s1502_s30 = scalar_lea.hbm %s1550_s3, %s896_s27 }
  0x56   : > { %928 = vmatpush3.bf16.msra.mxu0 %v1058_v0  ;;  %v1066_v4 = vld [vmem:[%s185_s9] sm:$0xff]   ;;  %v1064_v7 = vld [vmem:[#allocation5 + $0x8] sm:$0xff]   ;;  %v1431_v11 = vshrl.u32 %v240_v10, 7  ;;  %v1068_v27 = vld [vmem:[#allocation5 + $0x78] sm:$0xff]   ;;  %s759_s28 = sshll.u32 %s215_s20, 4  ;;  %s746_s4 = scalar_lea.sflag [#allocation4], %s1419_s5  ;;  %s1504_s28 = int_to_ptr.vmem [resolvable:$true] %s759_s28 }
  0x57   : > { %929 = vmatprep.subr.bf16.mxu0 %v1059_v1  ;;  %943 = vmatprep.mubr.bf16.mxu0 %v1066_v4  ;;  %v1063_v6 = vld [vmem:[#allocation5 + $0x10] sm:$0xff]   ;;  %v1065_v8 = vld [vmem:[#allocation5] sm:$0xff]   ;;  %v1067_v9 = vld [vmem:[%s185_s9 + $0x8] sm:$0xff]   ;;  %s1188_s21 = scalar_lea.vmem %s1504_s28, 512  ;;  %p1565_p2 = scmp.ne.s32.totalorder %s1559_s10, 0 }
  0x58   : > { %v242_v12 = vsub.s32 0, %v1431_v11  ;;  %v1434_v13 = vld [vmem:[#allocation7] sm:$0xff]  ;;  %947 = vmatprep.subr.bf16.mxu1 %v1068_v27  ;;  %v1069_v28 = vld [vmem:[#allocation5 + $0x70] sm:$0xff]   ;;  %v1070_v29 = vld [vmem:[#allocation5 + $0x68] sm:$0xff]   ;;  %v407_v63 = vsub.s32 1, %v1431_v11  ;;  %v415_v4 = vsub.s32 2, %v1431_v11  ;;  %p1189_p5 = scmp.ne.s32.totalorder %s1504_s28, %s1188_s21 }
  0x59   : > { %948 = vmatpush3.bf16.msra.mxu1 %v1068_v27  ;;  %v1071_v30 = vld [vmem:[#allocation5 + $0x60] sm:$0xff]   ;;  %v1072_v31 = vld [vmem:[#allocation5 + $0x58] sm:$0xff]   ;;  %v1073_v32 = vld [vmem:[#allocation5 + $0x50] sm:$0xff]   ;;  %s1263_s16 = smov [#allocation8]  }
  0x5a   : > { %930 = vmatpush3.bf16.msra.mxu0 %v1059_v1  ;;  %v243_v14 = vrot.slane %v1434_v13, %v242_v12  ;;  %949 = vmatprep.subr.bf16.mxu1 %v1069_v28  ;;  %v1074_v33 = vld [vmem:[#allocation5 + $0x48] sm:$0xff]   ;;  %v1075_v34 = vld [vmem:[#allocation5 + $0x40] sm:$0xff]   ;;  %p1190_p7 = pnand %p1189_p5, %p1565_p2  ;;  %s1192_s22 = sshll.u32 %s1263_s16, 4  ;;  %s1193_s22 = int_to_ptr.vmem [resolvable:$false] %s1192_s22 }
  0x5b   : > { %931 = vmatprep.subr.bf16.mxu0 %v1060_v2  ;;  %s1194_s17 = scalar_lea.vmem %s1193_s22, 1024  ;;  %p1195_p13 = scmp.lt.s32.totalorder %s1504_s28, %s1193_s22 }
  0x5c   : > { %p1191_p12 = pneg %p1190_p7  ;;  %p1196_p0 = scmp.lt.s32.totalorder %s1194_s17, %s1188_s21 }
  0x5d   : > { %950 = vmatpush3.bf16.msra.mxu1 %v1069_v28 }
  0x5e   : > { %932 = vmatpush3.bf16.msra.mxu0 %v1060_v2  ;;  %951 = vmatprep.subr.bf16.mxu1 %v1070_v29  ;;  %p1197_p10 = por %p1196_p0, %p1195_p13 }
  0x5f   : > { %933 = vmatprep.subr.bf16.mxu0 %v1061_v3 }
  0x60   : > { %p1198_p3 = pnand %p1197_p10, %p1191_p12 }
  0x61   : > { %952 = vmatpush3.bf16.msra.mxu1 %v1070_v29 }
  0x62   : > { %934 = vmatpush3.bf16.msra.mxu0 %v1061_v3  ;;  %953 = vmatprep.subr.bf16.mxu1 %v1071_v30  ;;  %v408_v3 = vrot.slane %v1434_v13, %v407_v63 }
  0x63   : > { %935 = vmatprep.subr.bf16.mxu0 %v1062_v5 }
  0x65   : > { %954 = vmatpush3.bf16.msra.mxu1 %v1071_v30 }
  0x66   : > { %936 = vmatpush3.bf16.msra.mxu0 %v1062_v5  ;;  %955 = vmatprep.subr.bf16.mxu1 %v1072_v31 }
  0x67   : > { %937 = vmatprep.subr.bf16.mxu0 %v1063_v6 }
  0x69   : > { %956 = vmatpush3.bf16.msra.mxu1 %v1072_v31 }
  0x6a   : > { %938 = vmatpush3.bf16.msra.mxu0 %v1063_v6  ;;  %957 = vmatprep.subr.bf16.mxu1 %v1073_v32 }
  0x6b   : > { %939 = vmatprep.subr.bf16.mxu0 %v1064_v7 }
  0x6d   : > { %958 = vmatpush3.bf16.msra.mxu1 %v1073_v32 }
  0x6e   : > { %940 = vmatpush3.bf16.msra.mxu0 %v1064_v7  ;;  %959 = vmatprep.subr.bf16.mxu1 %v1074_v33  ;;  %v416_v7 = vrot.slane %v1434_v13, %v415_v4 }
  0x6f   : > { %941 = vmatprep.subr.bf16.mxu0 %v1065_v8 }
  0x71   : > { %960 = vmatpush3.bf16.msra.mxu1 %v1074_v33 }
  0x72   : > { %942 = vmatpush3.bf16.msra.mxu0 %v1065_v8  ;;  %961 = vmatprep.subr.bf16.mxu1 %v1075_v34 }
  0x75   : > { %944 = vmatmul.mubr.bf16.vlgmr.msra.gmra.mxu0 %v1067_v9  ;;  %962 = vmatpush3.bf16.msra.mxu1 %v1075_v34 }
 0x135   : > { %v945_v15 = vpop.f32.mrf.mxu0 }
 0x136   : > { %v1437_v16 = vadd.f32 %v945_v15, %v243_v14 }
 0x137   : > { %v338_v17 = vpop.f32.mrf.mxu0 }
 0x138   : > { %v1439_v18 = vadd.f32 %v338_v17, %v243_v14  ;;  %357 = vadd.xlane.f32.xlu1 %v1437_v16  ;;  %v363_v26 = vmul.f32 %v1437_v16, %v1437_v16 }
 0x139   : > { %v946_v19 = vpop.f32.mrf.mxu0 }
 0x13a   : > { %v1442_v20 = vadd.f32 %v946_v19, %v243_v14  ;;  %353 = vadd.xlane.f32.xlu0 %v1439_v18  ;;  %v361_v23 = vmul.f32 %v1439_v18, %v1439_v18 }
 0x13b   : > { %v341_v21 = vpop.f32.mrf.mxu0 }
 0x13c   : > { %v1445_v22 = vadd.f32 %v341_v21, %v243_v14  ;;  %359 = vadd.xlane.f32.xlu1 %v1442_v20  ;;  %v364_v25 = vmul.f32 %v1442_v20, %v1442_v20 }
 0x13e   : > { %365 = vadd.xlane.f32.xlu0 %v361_v23  ;;  %v362_v24 = vmul.f32 %v1445_v22, %v1445_v22 }
 0x140   : > { %367 = vadd.xlane.f32.xlu1 %v362_v24 }
 0x142   : > { %355 = vadd.xlane.f32.xlu0 %v1445_v22 }
 0x144   : > { %371 = vadd.xlane.f32.xlu1 %v364_v25 }
 0x146   : > { %369 = vadd.xlane.f32.xlu0 %v363_v26 }
 0x1c1   : > { %v358_v35 = vpop.xlane.xlu1 %357 }
 0x1c2   : > { %v375_v46 = vmul.f32 0.0078125, %v358_v35 }
 0x1c3   : > { %v354_v36 = vpop.xlane.xlu0 %353 }
 0x1c4   : > { %v373_v37 = vmul.f32 0.0078125, %v354_v36  ;;  %v383_v55 = vmul.f32 %v375_v46, %v375_v46  ;;  %v399_v12 = vsub.f32 %v1437_v16, %v375_v46  ;;  %v446_v16 = vsub.s32 3, %v1431_v11  ;;  %v1077_v46 = vld [vmem:[#allocation5 + $0xb0] sm:$0xff]  }
 0x1c5   : > { %v360_v38 = vpop.xlane.xlu1 %359 }
 0x1c6   : > { %v381_v40 = vmul.f32 %v373_v37, %v373_v37  ;;  %v376_v42 = vmul.f32 0.0078125, %v360_v38  ;;  %v397_v0 = vsub.f32 %v1439_v18, %v373_v37  ;;  %v447_v32 = vrot.slane %v1434_v13, %v446_v16 }
 0x1c7   : > { %v366_v39 = vpop.xlane.xlu0 %365 }
 0x1c8   : > { %v377_v41 = vmul.f32 0.0078125, %v366_v39  ;;  %v384_v49 = vmul.f32 %v376_v42, %v376_v42  ;;  %v400_v9 = vsub.f32 %v1442_v20, %v376_v42 }
 0x1c9   : > { %v368_v43 = vpop.xlane.xlu1 %367 }
 0x1ca   : > { %v385_v44 = vsub.f32 %v377_v41, %v381_v40  ;;  %v378_v51 = vmul.f32 0.0078125, %v368_v43 }
 0x1cb   : > { %v356_v45 = vpop.xlane.xlu0 %355 }
 0x1cc   : > { %v389_v47 = vadd.f32 1e-05, %v385_v44  ;;  %v374_v48 = vmul.f32 0.0078125, %v356_v45  ;;  %v1076_v45 = vld [vmem:[#allocation5 + $0xb8] sm:$0xff]  }
 0x1cd   : > { %v372_v50 = vpop.xlane.xlu1 %371  ;;  %967 = vmatprep.subr.bf16.mxu0 %v1076_v45 }
 0x1ce   : > { %1084 = vrsqrt.f32 %v389_v47  ;;  %v382_v52 = vmul.f32 %v374_v48, %v374_v48  ;;  %v380_v53 = vmul.f32 0.0078125, %v372_v50  ;;  %v398_v5 = vsub.f32 %v1445_v22, %v374_v48  ;;  %968 = vmatpush3.bf16.msra.mxu0 %v1076_v45  ;;  %v1078_v47 = vld [vmem:[#allocation5 + $0xa8] sm:$0xff]   ;;  %v1079_v48 = vld [vmem:[#allocation5 + $0xa0] sm:$0xff]   ;;  %v1081_v50 = vld [vmem:[#allocation5 + $0x90] sm:$0xff]  }
 0x1cf   : > { %v370_v54 = vpop.xlane.xlu0 %369  ;;  %969 = vmatprep.subr.bf16.mxu0 %v1077_v46 }
 0x1d0   : > { %v386_v56 = vsub.f32 %v378_v51, %v382_v52  ;;  %v388_v57 = vsub.f32 %v380_v53, %v384_v49  ;;  %v379_v58 = vmul.f32 0.0078125, %v370_v54  ;;  %v1080_v49 = vld [vmem:[#allocation5 + $0x98] sm:$0xff]   ;;  %v1082_v51 = vld [vmem:[#allocation5 + $0x88] sm:$0xff]   ;;  %v1083_v52 = vld [vmem:[#allocation5 + $0x80] sm:$0xff]  }
 0x1d2   : > { %v390_v59 = vadd.f32 1e-05, %v386_v56  ;;  %v392_v60 = vadd.f32 1e-05, %v388_v57  ;;  %v387_v61 = vsub.f32 %v379_v58, %v383_v55  ;;  %970 = vmatpush3.bf16.msra.mxu0 %v1077_v46 }
 0x1d3   : > { %971 = vmatprep.subr.bf16.mxu0 %v1078_v47 }
 0x1d4   : > { %1086 = vrsqrt.f32 %v390_v59  ;;  %v391_v62 = vadd.f32 1e-05, %v387_v61 }
 0x1d5   : > { %1088 = vrsqrt.f32 %v392_v60 }
 0x1d6   : > { %1090 = vrsqrt.f32 %v391_v62  ;;  %972 = vmatpush3.bf16.msra.mxu0 %v1078_v47 }
 0x1d7   : > { %973 = vmatprep.subr.bf16.mxu0 %v1079_v48 }
 0x1da   : > { %974 = vmatpush3.bf16.msra.mxu0 %v1079_v48 }
 0x1db   : > { %v1085_v1 = vpop.eup %1084  ;;  %975 = vmatprep.subr.bf16.mxu0 %v1080_v49 }
 0x1dc   : > { %v401_v2 = vmul.f32 %v1085_v1, %v397_v0 }
 0x1de   : > { %v409_v6 = vmul.f32 %v408_v3, %v401_v2  ;;  %976 = vmatpush3.bf16.msra.mxu0 %v1080_v49 }
 0x1df   : > { %977 = vmatprep.subr.bf16.mxu0 %v1081_v50 }
 0x1e0   : > { %v417_v19 = vadd.f32 %v416_v7, %v409_v6 }
 0x1e1   : > { %v1087_v8 = vpop.eup %1086 }
 0x1e2   : > { %v1089_v10 = vpop.eup %1088  ;;  %v402_v14 = vmul.f32 %v1087_v8, %v398_v5  ;;  %v421_v22 = vmax.f32 %v417_v19, 0.0  ;;  %978 = vmatpush3.bf16.msra.mxu0 %v1081_v50 }
 0x1e3   : > { %v1091_v15 = vpop.eup %1090  ;;  %v404_v17 = vmul.f32 %v1089_v10, %v400_v9  ;;  %979 = vmatprep.subr.bf16.mxu0 %v1082_v51 }
 0x1e4   : > { %v410_v18 = vmul.f32 %v408_v3, %v402_v14  ;;  %v403_v21 = vmul.f32 %v1091_v15, %v399_v12 }
 0x1e5   : > { %v412_v23 = vmul.f32 %v408_v3, %v404_v17 }
 0x1e6   : > { %v418_v24 = vadd.f32 %v416_v7, %v410_v18  ;;  %v411_v25 = vmul.f32 %v408_v3, %v403_v21  ;;  %980 = vmatpush3.bf16.msra.mxu0 %v1082_v51  ;;  %v599_v21 = vsub.s32 4, %v1431_v11 }
 0x1e7   : > { %v420_v26 = vadd.f32 %v416_v7, %v412_v23  ;;  %981 = vmatprep.subr.bf16.mxu0 %v1083_v52 }
 0x1e8   : > { %v422_v27 = vmax.f32 %v418_v24, 0.0  ;;  %v419_v28 = vadd.f32 %v416_v7, %v411_v25  ;;  %v600_v24 = vrot.slane %v1434_v13, %v599_v21  ;;  %v607_v25 = vsub.s32 5, %v1431_v11 }
 0x1e9   : > { %v424_v31 = vmax.f32 %v420_v26, 0.0 }
 0x1ea   : > { %v425_v29 = vpack.c.bf16 %v422_v27, %v421_v22  ;;  %v423_v30 = vmax.f32 %v419_v28, 0.0  ;;  %982 = vmatpush3.bf16.msra.mxu0 %v1083_v52 }
 0x1ec   : > { %963 = vmatprep.mubr.bf16.mxu1 %v425_v29  ;;  %v426_v20 = vpack.c.bf16 %v424_v31, %v423_v30  ;;  %v608_v29 = vrot.slane %v1434_v13, %v607_v25 }
 0x1ee   : > { %964 = vmatmul.mubr.bf16.vlgmr.msra.gmra.mxu1 %v426_v20 }
 0x2ae   : > { %v965_v33 = vpop.f32.mrf.mxu1 }
 0x2af   : > { %v1467_v34 = vadd.f32 %v965_v33, %v447_v32 }
 0x2b0   : > { %v530_v35 = vpop.f32.mrf.mxu1 }
 0x2b1   : > { %549 = vadd.xlane.f32.xlu0 %v1467_v34  ;;  %v1470_v37 = vadd.f32 %v530_v35, %v447_v32  ;;  %v555_v43 = vmul.f32 %v1467_v34, %v1467_v34 }
 0x2b2   : > { %v966_v36 = vpop.f32.mrf.mxu1 }
 0x2b3   : > { %v1472_v38 = vadd.f32 %v966_v36, %v447_v32  ;;  %v553_v41 = vmul.f32 %v1470_v37, %v1470_v37 }
 0x2b4   : > { %v533_v39 = vpop.f32.mrf.mxu1 }
 0x2b5   : > { %551 = vadd.xlane.f32.xlu1 %v1472_v38  ;;  %545 = vadd.xlane.f32.xlu0 %v1470_v37  ;;  %v1476_v40 = vadd.f32 %v533_v39, %v447_v32  ;;  %v556_v44 = vmul.f32 %v1472_v38, %v1472_v38 }
 0x2b7   : > { %v554_v42 = vmul.f32 %v1476_v40, %v1476_v40 }
 0x2b9   : > { %547 = vadd.xlane.f32.xlu1 %v1476_v40  ;;  %557 = vadd.xlane.f32.xlu0 %v553_v41 }
 0x2bd   : > { %559 = vadd.xlane.f32.xlu1 %v554_v42  ;;  %561 = vadd.xlane.f32.xlu0 %v555_v43 }
 0x2c1   : > { %563 = vadd.xlane.f32.xlu1 %v556_v44 }
 0x33a   : > { %v550_v53 = vpop.xlane.xlu0 %549 }
 0x33b   : > { %v567_v57 = vmul.f32 0.0078125, %v550_v53 }
 0x33d   : > { %v575_v0 = vmul.f32 %v567_v57, %v567_v57  ;;  %v591_v31 = vsub.f32 %v1467_v34, %v567_v57 }
 0x33e   : > { %v552_v54 = vpop.xlane.xlu1 %551  ;;  %v546_v55 = vpop.xlane.xlu0 %545 }
 0x33f   : > { %v565_v56 = vmul.f32 0.0078125, %v546_v55  ;;  %v568_v1 = vmul.f32 0.0078125, %v552_v54 }
 0x341   : > { %v573_v60 = vmul.f32 %v565_v56, %v565_v56  ;;  %v576_v12 = vmul.f32 %v568_v1, %v568_v1  ;;  %v589_v23 = vsub.f32 %v1470_v37, %v565_v56  ;;  %v592_v33 = vsub.f32 %v1472_v38, %v568_v1 }
 0x342   : > { %v548_v58 = vpop.xlane.xlu1 %547  ;;  %v558_v59 = vpop.xlane.xlu0 %557  ;;  %v638_v38 = vsub.s32 6, %v1431_v11 }
 0x343   : > { %v566_v61 = vmul.f32 0.0078125, %v548_v58  ;;  %v569_v62 = vmul.f32 0.0078125, %v558_v59 }
 0x344   : > { %v639_v50 = vrot.slane %v1434_v13, %v638_v38 }
 0x345   : > { %v577_v63 = vsub.f32 %v569_v62, %v573_v60  ;;  %v574_v4 = vmul.f32 %v566_v61, %v566_v61  ;;  %v590_v27 = vsub.f32 %v1476_v40, %v566_v61 }
 0x346   : > { %v560_v2 = vpop.xlane.xlu1 %559  ;;  %v562_v3 = vpop.xlane.xlu0 %561 }
 0x347   : > { %v581_v5 = vadd.f32 1e-05, %v577_v63  ;;  %v570_v6 = vmul.f32 0.0078125, %v560_v2  ;;  %v571_v7 = vmul.f32 0.0078125, %v562_v3 }
 0x349   : > { %1092 = vrsqrt.f32 %v581_v5  ;;  %v578_v8 = vsub.f32 %v570_v6, %v574_v4  ;;  %v579_v9 = vsub.f32 %v571_v7, %v575_v0 }
 0x34a   : > { %v564_v10 = vpop.xlane.xlu1 %563 }
 0x34b   : > { %v582_v14 = vadd.f32 1e-05, %v578_v8  ;;  %v583_v15 = vadd.f32 1e-05, %v579_v9  ;;  %v572_v17 = vmul.f32 0.0078125, %v564_v10 }
 0x34d   : > { %1094 = vrsqrt.f32 %v582_v14  ;;  %v580_v18 = vsub.f32 %v572_v17, %v576_v12 }
 0x34e   : > { %1096 = vrsqrt.f32 %v583_v15 }
 0x34f   : > { %v584_v19 = vadd.f32 1e-05, %v580_v18 }
 0x351   : > { %1098 = vrsqrt.f32 %v584_v19 }
 0x356   : > { %v1093_v26 = vpop.eup %1092 }
 0x357   : > { %v593_v22 = vmul.f32 %v1093_v26, %v589_v23 }
 0x359   : > { %v601_v28 = vmul.f32 %v600_v24, %v593_v22 }
 0x35a   : > { %v1095_v30 = vpop.eup %1094 }
 0x35b   : > { %v1097_v20 = vpop.eup %1096  ;;  %v594_v16 = vmul.f32 %v1095_v30, %v590_v27  ;;  %v609_v36 = vadd.f32 %v608_v29, %v601_v28 }
 0x35c   : > { %v595_v32 = vmul.f32 %v1097_v20, %v591_v31 }
 0x35d   : > { %v602_v35 = vmul.f32 %v600_v24, %v594_v16  ;;  %v613_v43 = vmax.f32 %v609_v36, 0.0 }
 0x35e   : > { %v1099_v37 = vpop.eup %1098  ;;  %v603_v39 = vmul.f32 %v600_v24, %v595_v32 }
 0x35f   : > { %v610_v41 = vadd.f32 %v608_v29, %v602_v35  ;;  %v596_v42 = vmul.f32 %v1099_v37, %v592_v33 }
 0x360   : > { %v611_v45 = vadd.f32 %v608_v29, %v603_v39 }
 0x361   : > { %v614_v44 = vmax.f32 %v610_v41, 0.0  ;;  %v604_v40 = vmul.f32 %v600_v24, %v596_v42 }
 0x362   : > { %v615_v48 = vmax.f32 %v611_v45, 0.0 }
 0x363   : > { %v617_v46 = vpack.c.bf16 %v614_v44, %v613_v43  ;;  %v612_v47 = vadd.f32 %v608_v29, %v604_v40 }
 0x365   : > { %983 = vmatprep.mubr.bf16.mxu0 %v617_v46  ;;  %v616_v34 = vmax.f32 %v612_v47, 0.0 }
 0x367   : > { %v618_v49 = vpack.c.bf16 %v616_v34, %v615_v48 }
 0x369   : > { %984 = vmatmul.mubr.bf16.vlgmr.msra.gmra.mxu0 %v618_v49 }
 0x429   : > { %v985_v51 = vpop.f32.mrf.mxu0 }
 0x42a   : > { %v731_v52 = vadd.f32 %v985_v51, %v639_v50 }
 0x42b   : > { %v722_v53 = vpop.f32.mrf.mxu0 }
 0x42c   : > { %1100 = vtanh.f32 %v731_v52  ;;  %v723_v54 = vadd.f32 %v722_v53, %v639_v50 }
 0x42d   : > { %v986_v55 = vpop.f32.mrf.mxu0 }
 0x42e   : > { %1102 = vtanh.f32 %v723_v54  ;;  %v734_v56 = vadd.f32 %v986_v55, %v639_v50 }
 0x42f   : > { %v725_v57 = vpop.f32.mrf.mxu0 }
 0x430   : > { %1104 = vtanh.f32 %v734_v56  ;;  %v726_v58 = vadd.f32 %v725_v57, %v639_v50 }
 0x432   : > { %1106 = vtanh.f32 %v726_v58 }
 0x439   : > { %v1101_v59 = vpop.eup %1100 }
 0x43a   : > { %743 = vst [vmem:[%s215_s20 + $0x10] sm:$0xff] %v1101_v59 }
 0x43b   : > { %v1103_v11 = vpop.eup %1102 }
 0x43c   : > { %741 = vst [vmem:[%s215_s20] sm:$0xff] %v1103_v11 }
 0x43d   : > { %v1105_v13 = vpop.eup %1104 }
 0x43e   : > { %744 = vst [vmem:[%s215_s20 + $0x18] sm:$0xff] %v1105_v13 }
 0x43f   : > { %v1107_v60 = vpop.eup %1106 }
 0x440   : > { %742 = vst [vmem:[%s215_s20 + $0x8] sm:$0xff] %v1107_v60 }
 0x441   : > { %1201 = shalt.err (!%p1198_p3)
}
 0x442   : > { %s1202_s23 = scalar_lea.hbm %s1502_s30, 512  ;;  %s1206_s6 = scalar_lea.hbm %s1550_s3, 1024 }
 0x443   : > { %p1203_p11 = scmp.ne.s32.totalorder %s1502_s30, %s1202_s23  ;;  %p1207_p4 = scmp.lt.s32.totalorder %s1502_s30, %s1550_s3 }
 0x444   : > { %p1208_p6 = scmp.lt.s32.totalorder %s1206_s6, %s1202_s23 }
 0x445   : > { %p1204_p9 = pnand %p1203_p11, %p1565_p2 }
 0x446   : > { %p1209_p8 = por %p1208_p6, %p1207_p4 }
 0x447   : > { %p1205_p1 = pneg %p1204_p9 }
 0x449   : > { %p1210_p5 = pnand %p1209_p8, %p1205_p1 }
 0x44b   : > { %1213 = shalt.err (!%p1210_p5)
}
 0x44c   : > { %s1264_s18 = smov 128   ;;  %s1265_s20 = smov 8  }
 0x44d   : > { %997 = dma.vmem_to_hbm [thread:$0]  (%p1565_p2), %s1504_s28, 512, %s1502_s30, %s746_s4, %s1264_s18, %s1264_s18, %s1265_s20  }
 0x44e PF: > { %s774_s27 = sand.u32 1, %s1244_s12   ;;  %p1566_p7 = scmp.ne.s32.totalorder %s1556_s19, 0 }
 0x44f   : > { %p1567_p12 = scmp.ge.s32.totalorder %s1256_s15, 2  ;;  %s775_s25 = scalar_lea.sflag [#allocation4], %s774_s27 }
 0x451   : > { %p1011_p13 = pnand %p1567_p12, %p1566_p7 }
 0x453   : > { %p1012_p0 = pneg %p1011_p13 }
 0x455   : > { %1239 = dma.done.wait (%p1012_p0), %s775_s25, 512  }
 0x456   : > { %1241 = vsyncadd (%p1012_p0), %s775_s25, 4294966784  ;;  %p17_p10 = scmp.ge.s32.totalorder %s1361_s7, 4   ;;  %s1568_s12 = smov %s1248_s13 }
 0x457   : > { %s1569_s13 = smov %s1252_s14  ;;  %s1570_s14 = smov %s1377_s11 }
 0x458   : > { %s1571_s15 = smov %s1361_s7  ;;  %19 = sbr.rel (!%p17_p10) target bundleno = 6 (0x6), region = 87 }
 0x45d   :  { %780 = vsyncpa [#allocation3], 1 }
 0x45e   :  { %782 = vsyncpa [#allocation3 + $0x1], 1 }
 0x45f   :  { %783 = vsyncpa [#allocation6], 1 }
 0x460   :  { %784 = vsyncpa [#allocation4], 1 }
 0x461   :  { %786 = vsyncpa [#allocation4 + $0x1], 1 }

</bundles_post_ra>
